<compile_context>
chip_gen: v7x
topology: tpu7x:2x2x1
jax: 0.10.0
libtpu: 0.0.40
codegen_flags: <defaults>
</compile_context>

<pallas_src>
import functools

import jax
import jax.numpy as jnp
import numpy as np
from jax.experimental import pallas as pl
from jax.experimental.pallas import tpu as pltpu

# ---- "config" values (the reference module reads a global `config`) --------
IGNORE_LABEL = -1
NUM_OUTPUTS = 1            # config.MODEL.NUM_OUTPUTS
BALANCE_WEIGHTS = (1.0,)   # config.LOSS.BALANCE_WEIGHTS
ALIGN_CORNERS = False      # config.MODEL.ALIGN_CORNERS
# TODO(synk): align_corners=True bilinear resize has no exact jax.image.resize
# equivalent; the glue below uses half-pixel (align_corners=False) semantics.

MAX_TILE_N = 2048  # pixels per grid step along the lane axis (multiple of 128)


def _ce_kernel(logits_ref, tgt_ref, sum_ref, cnt_ref, *, ignore_label, hw):
    """Per-tile softmax cross entropy: pixels in lanes, classes in sublanes."""
    b = pl.program_id(0)
    j = pl.program_id(1)

    @pl.when(jnp.logical_and(b == 0, j == 0))
    def _init():
        sum_ref[...] = jnp.zeros_like(sum_ref)
        cnt_ref[...] = jnp.zeros_like(cnt_ref)

    x = logits_ref[0].astype(jnp.float32)        # (C, TILE_N)
    t = tgt_ref[0]                               # (1, TILE_N) int32
    tile_n = x.shape[1]

    # Mask the ragged tail of the pixel axis: out-of-bounds DMA pad is garbage
    # and must be forced finite BEFORE exp/logsumexp.
    lane = jax.lax.broadcasted_iota(jnp.int32, (1, tile_n), 1)
    in_bounds = (j * tile_n + lane) < hw         # (1, TILE_N) bool
    x = jnp.where(in_bounds, x, 0.0)

    # Numerically stable log-softmax denominator over the class (sublane) axis.
    m = jnp.max(x, axis=0, keepdims=True)                        # (1, TILE_N)
    lse = m + jnp.log(jnp.sum(jnp.exp(x - m), axis=0, keepdims=True))

    # Gather the target-class logit via compare-select (no dynamic gather,
    # no materialized one-hot float temp).
    cls = jax.lax.broadcasted_iota(jnp.int32, x.shape, 0)        # (C, TILE_N)
    tgt_logit = jnp.sum(jnp.where(cls == t, x, 0.0), axis=0, keepdims=True)

    valid = jnp.logical_and(in_bounds, t != ignore_label).astype(jnp.float32)
    loss = (lse - tgt_logit) * valid                             # (1, TILE_N)

    # Lane-wide partial sums (VPU vector add per step); reduced once outside.
    sum_ref[...] += loss
    cnt_ref[...] += valid


def _pixelwise_ce(score, target, ignore_label):
    """score: (N, C, H, W) logits (any float dtype); target: (N, H, W) ints."""
    n, c, h, w = score.shape
    hw = h * w
    logits = score.reshape(n, c, hw)                    # free contiguous reshape
    tgt = target.reshape(n, 1, hw).astype(jnp.int32)

    if hw < 128:
        # Tiny inputs only: pad the lane axis up to one vreg width (cheap).
        pad = 128 - hw
        logits = jnp.pad(logits, ((0, 0), (0, 0), (0, pad)))
        tgt = jnp.pad(tgt, ((0, 0), (0, 0), (0, pad)),
                      constant_values=ignore_label)
    hw_padded = logits.shape[-1]
    tile_n = min(MAX_TILE_N, (hw_padded // 128) * 128)
    num_tiles = pl.cdiv(hw_padded, tile_n)

    sum_out, cnt_out = pl.pallas_call(
        functools.partial(_ce_kernel, ignore_label=ignore_label, hw=hw),
        out_shape=(jax.ShapeDtypeStruct((1, tile_n), jnp.float32),
                   jax.ShapeDtypeStruct((1, tile_n), jnp.float32)),
        grid_spec=pltpu.PrefetchScalarGridSpec(
            num_scalar_prefetch=0,
            grid=(n, num_tiles),
            in_specs=[
                pl.BlockSpec((1, c, tile_n), lambda b, j: (b, 0, j)),
                pl.BlockSpec((1, 1, tile_n), lambda b, j: (b, 0, j)),
            ],
            out_specs=[
                pl.BlockSpec((1, tile_n), lambda b, j: (0, 0)),
                pl.BlockSpec((1, tile_n), lambda b, j: (0, 0)),
            ],
        ),
        compiler_params=pltpu.CompilerParams(
            dimension_semantics=("arbitrary", "arbitrary")),
    )(logits, tgt)

    # nn.CrossEntropyLoss(reduction='mean', ignore_index=...) semantics:
    # sum of per-pixel losses / number of non-ignored pixels.
    return jnp.sum(sum_out) / jnp.sum(cnt_out)


def _forward_single(score, target, ignore_label=IGNORE_LABEL):
    """score: (N, C, H', W') logits; target: (N, H, W) int labels."""
    n, c, ph, pw = score.shape
    _, h, w = target.shape
    if ph != h or pw != w:
        # bilinear resize (glue), NCHW spatial dims only
        score = jax.image.resize(score, (n, c, h, w), method="bilinear")
    return _pixelwise_ce(score, target, ignore_label)


def cross_entropy_forward(score, target):
    """Mirrors CrossEntropy.forward with NUM_OUTPUTS / BALANCE_WEIGHTS config."""
    if NUM_OUTPUTS == 1:
        score = [score]
    weights = BALANCE_WEIGHTS
    assert len(weights) == len(score)
    return sum(w * _forward_single(x, target) for w, x in zip(weights, score))


def _reference_loss(score, target, ignore_label=IGNORE_LABEL):
    """Pure-JAX reference for validation."""
    n, c, h, w = score.shape
    logits = jnp.transpose(score, (0, 2, 3, 1)).reshape(-1, c).astype(jnp.float32)
    tgt = target.reshape(-1).astype(jnp.int32)
    logz = jax.scipy.special.logsumexp(logits, axis=-1)
    safe_tgt = jnp.where(tgt == ignore_label, 0, tgt)
    picked = jnp.take_along_axis(logits, safe_tgt[:, None], axis=-1)[:, 0]
    valid = (tgt != ignore_label).astype(jnp.float32)
    loss = (logz - picked) * valid
    return jnp.sum(loss) / jnp.sum(valid)


if __name__ == "__main__":
    key = jax.random.PRNGKey(0)
    k1, k2, k3 = jax.random.split(key, 3)

    N, C, H, W = 2, 4, 16, 16
    score = jax.random.normal(k1, (N, C, H, W), dtype=jnp.float32)
    target = jax.random.randint(k2, (N, H, W), 0, C, dtype=jnp.int32)
    # sprinkle some ignored pixels
    ignore_mask = jax.random.uniform(k3, (N, H, W)) < 0.1
    target = jnp.where(ignore_mask, IGNORE_LABEL, target)

    loss = cross_entropy_forward(score, target)
    loss = jax.block_until_ready(loss)

    ref = jax.block_until_ready(_reference_loss(score, target))
    assert np.isclose(np.asarray(loss), np.asarray(ref), rtol=1e-5, atol=1e-5), (
        float(loss), float(ref))

    print("KERNEL_OK")
</pallas_src>

<mosaic_0001>
module attributes {stable_mosaic.version = 11 : i64} {
  func.func @_ce_kernel(%arg0: i32, %arg1: i32, %arg2: memref<1x4x256xf32, #tpu.memory_space<vmem>>, %arg3: memref<1x1x256xi32, #tpu.memory_space<vmem>>, %arg4: memref<1x256xf32, #tpu.memory_space<vmem>>, %arg5: memref<1x256xf32, #tpu.memory_space<vmem>>) attributes {dimension_semantics = [#tpu.dimension_semantics<arbitrary>, #tpu.dimension_semantics<arbitrary>], iteration_bounds = array<i64: 2, 1>, scalar_prefetch = 0 : i64, scratch_operands = 0 : i64, tpu.core_type = #tpu.core_type<tc>, window_params = [{transform_indices = @transform_0, window_bounds = array<i64: 1, 4, 256>}, {transform_indices = @transform_1, window_bounds = array<i64: 1, 1, 256>}, {pipeline_mode = #tpu.pipeline_mode<synchronous>, transform_indices = @transform_2, window_bounds = array<i64: 1, 256>}, {pipeline_mode = #tpu.pipeline_mode<synchronous>, transform_indices = @transform_3, window_bounds = array<i64: 1, 256>}]} {
    %c0_i32 = arith.constant 0 : i32
    %0 = arith.cmpi eq, %arg0, %c0_i32 : i32
    %c0_i32_0 = arith.constant 0 : i32
    %1 = arith.cmpi eq, %arg1, %c0_i32_0 : i32
    %2 = arith.andi %0, %1 : i1
    %3 = arith.extui %2 : i1 to i32
    %c0_i32_1 = arith.constant 0 : i32
    %4 = arith.cmpi ne, %3, %c0_i32_1 : i32
    scf.if %4 {
      %cst_20 = arith.constant 0.000000e+00 : f32
      %48 = vector.broadcast %cst_20 : f32 to vector<1x256xf32>
      %c0_21 = arith.constant 0 : index
      %c0_22 = arith.constant 0 : index
      %49 = vector.load %arg4[%c0_21, %c0_22] : memref<1x256xf32, #tpu.memory_space<vmem>>, vector<1x256xf32>
      tpu.vector_store %arg4[%c0_21, %c0_22], %48 {strides = array<i32>} : memref<1x256xf32, #tpu.memory_space<vmem>>, vector<1x256xf32>,
      %cst_23 = arith.constant 0.000000e+00 : f32
      %50 = vector.broadcast %cst_23 : f32 to vector<1x256xf32>
      %c0_24 = arith.constant 0 : index
      %c0_25 = arith.constant 0 : index
      %51 = vector.load %arg5[%c0_24, %c0_25] : memref<1x256xf32, #tpu.memory_space<vmem>>, vector<1x256xf32>
      tpu.vector_store %arg5[%c0_24, %c0_25], %50 {strides = array<i32>} : memref<1x256xf32, #tpu.memory_space<vmem>>, vector<1x256xf32>,
    } else {
    }
    %c0 = arith.constant 0 : index
    %c0_2 = arith.constant 0 : index
    %c0_3 = arith.constant 0 : index
    %5 = vector.load %arg2[%c0, %c0_2, %c0_3] : memref<1x4x256xf32, #tpu.memory_space<vmem>>, vector<1x4x256xf32>
    %6 = vector.shape_cast %5 : vector<1x4x256xf32> to vector<4x256xf32>
    %c0_4 = arith.constant 0 : index
    %c0_5 = arith.constant 0 : index
    %c0_6 = arith.constant 0 : index
    %7 = vector.load %arg3[%c0_4, %c0_5, %c0_6] : memref<1x1x256xi32, #tpu.memory_space<vmem>>, vector<1x1x256xi32>
    %8 = vector.shape_cast %7 : vector<1x1x256xi32> to vector<1x256xi32>
    %9 = tpu.iota {dimensions = array<i32: 1>} : vector<1x256xi32>
    %c256_i32 = arith.constant 256 : i32
    %10 = arith.muli %arg1, %c256_i32 : i32
    %11 = vector.broadcast %10 : i32 to vector<1x256xi32>
    %12 = arith.addi %11, %9 : vector<1x256xi32>
    %c256_i32_7 = arith.constant 256 : i32
    %13 = vector.broadcast %c256_i32_7 : i32 to vector<1x256xi32>
    %14 = arith.cmpi slt, %12, %13 : vector<1x256xi32>
    %cst = arith.constant 0.000000e+00 : f32
    %15 = vector.shape_cast %14 : vector<1x256xi1> to vector<1x256xi1>
    %16 = vector.broadcast %15 : vector<1x256xi1> to vector<4x256xi1>
    %17 = vector.broadcast %cst : f32 to vector<4x256xf32>
    %18 = arith.select %16, %6, %17 : vector<4x256xi1>, vector<4x256xf32>
    %cst_8 = arith.constant dense<0xFF800000> : vector<256xf32>
    %19 = vector.multi_reduction <maximumf>, %18, %cst_8 [0] : vector<4x256xf32> to vector<256xf32>
    %20 = vector.shape_cast %19 : vector<256xf32> to vector<1x256xf32>
    %21 = vector.broadcast %20 : vector<1x256xf32> to vector<4x256xf32>
    %22 = arith.subf %18, %21 : vector<4x256xf32>
    %23 = math.exp %22 : vector<4x256xf32>
    %cst_9 = arith.constant dense<0.000000e+00> : vector<256xf32>
    %24 = vector.multi_reduction <add>, %23, %cst_9 [0] : vector<4x256xf32> to vector<256xf32>
    %25 = vector.shape_cast %24 : vector<256xf32> to vector<1x256xf32>
    %26 = math.log %25 : vector<1x256xf32>
    %27 = arith.addf %20, %26 : vector<1x256xf32>
    %28 = tpu.iota {dimensions = array<i32: 0>} : vector<4x256xi32>
    %29 = vector.broadcast %8 : vector<1x256xi32> to vector<4x256xi32>
    %30 = arith.cmpi eq, %28, %29 : vector<4x256xi32>
    %cst_10 = arith.constant 0.000000e+00 : f32
    %31 = vector.broadcast %cst_10 : f32 to vector<4x256xf32>
    %32 = arith.select %30, %18, %31 : vector<4x256xi1>, vector<4x256xf32>
    %cst_11 = arith.constant dense<0.000000e+00> : vector<256xf32>
    %33 = vector.multi_reduction <add>, %32, %cst_11 [0] : vector<4x256xf32> to vector<256xf32>
    %34 = vector.shape_cast %33 : vector<256xf32> to vector<1x256xf32>
    %c-1_i32 = arith.constant -1 : i32
    %35 = vector.broadcast %c-1_i32 : i32 to vector<1x256xi32>
    %36 = arith.cmpi ne, %8, %35 : vector<1x256xi32>
    %37 = arith.andi %14, %36 : vector<1x256xi1>
    %38 = arith.extui %37 : vector<1x256xi1> to vector<1x256xi32>
    %39 = arith.sitofp %38 : vector<1x256xi32> to vector<1x256xf32>
    %40 = arith.subf %27, %34 : vector<1x256xf32>
    %41 = arith.mulf %40, %39 : vector<1x256xf32>
    %c0_12 = arith.constant 0 : index
    %c0_13 = arith.constant 0 : index
    %42 = vector.load %arg4[%c0_12, %c0_13] : memref<1x256xf32, #tpu.memory_space<vmem>>, vector<1x256xf32>
    %43 = arith.addf %42, %41 : vector<1x256xf32>
    %c0_14 = arith.constant 0 : index
    %c0_15 = arith.constant 0 : index
    %44 = vector.load %arg4[%c0_14, %c0_15] : memref<1x256xf32, #tpu.memory_space<vmem>>, vector<1x256xf32>
    tpu.vector_store %arg4[%c0_14, %c0_15], %43 {strides = array<i32>} : memref<1x256xf32, #tpu.memory_space<vmem>>, vector<1x256xf32>,
    %c0_16 = arith.constant 0 : index
    %c0_17 = arith.constant 0 : index
    %45 = vector.load %arg5[%c0_16, %c0_17] : memref<1x256xf32, #tpu.memory_space<vmem>>, vector<1x256xf32>
    %46 = arith.addf %45, %39 : vector<1x256xf32>
    %c0_18 = arith.constant 0 : index
    %c0_19 = arith.constant 0 : index
    %47 = vector.load %arg5[%c0_18, %c0_19] : memref<1x256xf32, #tpu.memory_space<vmem>>, vector<1x256xf32>
    tpu.vector_store %arg5[%c0_18, %c0_19], %46 {strides = array<i32>} : memref<1x256xf32, #tpu.memory_space<vmem>>, vector<1x256xf32>,
    return
  }
  func.func @transform_0(%arg0: i32, %arg1: i32) -> (i32, i32, i32) {
    %c0_i32 = arith.constant 0 : i32
    %c0_i32_0 = arith.constant 0 : i32
    return %arg0, %c0_i32, %arg1 : i32, i32, i32
  }
  func.func @transform_1(%arg0: i32, %arg1: i32) -> (i32, i32, i32) {
    %c0_i32 = arith.constant 0 : i32
    %c0_i32_0 = arith.constant 0 : i32
    return %arg0, %c0_i32, %arg1 : i32, i32, i32
  }
  func.func @transform_2(%arg0: i32, %arg1: i32) -> (i32, i32) {
    %c0_i32 = arith.constant 0 : i32
    %c0_i32_0 = arith.constant 0 : i32
    %c0_i32_1 = arith.constant 0 : i32
    return %c0_i32, %c0_i32_0 : i32, i32
  }
  func.func @transform_3(%arg0: i32, %arg1: i32) -> (i32, i32) {
    %c0_i32 = arith.constant 0 : i32
    %c0_i32_0 = arith.constant 0 : i32
    %c0_i32_1 = arith.constant 0 : i32
    return %c0_i32, %c0_i32_0 : i32, i32
  }
}

</mosaic_0001>

<bundles_post_ra>
// kernel: tpu_custom_call.1
= control target key start
LH: loop header
LB: loop body
LE: loop exit
PB: predicated region body
PF: predicated region fallthrough
CT: control target
= control target key end

     0   :  { %9 = vsyncpa [#allocation3], 0  ;;  %s1109_s0 = inlined_call_operand.hbm [shape: f32[2,4,256], index: 0, kind: input, shape index: {}]   ;;  %s1110_s1 = inlined_call_operand.hbm [shape: s32[2,1,256], index: 1, kind: input, shape index: {}]   ;;  %s1111_s2 = inlined_call_operand.hbm [shape: f32[1,256], index: 2, kind: output, shape index: {0}]   ;;  %s1112_s3 = inlined_call_operand.hbm [shape: f32[1,256], index: 3, kind: output, shape index: {1}]  }
   0x1   :  { %11 = vsyncpa [#allocation3 + $0x1], 0 }
   0x2   :  { %12 = vsyncpa [#allocation6], 0 }
   0x3   :  { %14 = vsyncpa [#allocation6 + $0x1], 0 }
   0x4   :  { %15 = vsyncpa [#allocation4], 0 }
   0x5   :  { %16 = vsyncpa [#allocation9], 0  ;;  %s835_s12 = smov 0   ;;  %s837_s13 = smov 0  }
   0x6   :  { %s839_s14 = smov 0   ;;  %s841_s15 = smov 0  }
   0x7   :  { %s843_s16 = smov 0   ;;  %s845_s17 = smov 0  }
   0x8 LB: > { %s520_s18 = sadd.s32 4294967295, %s805_s17   ;;  %s34_s19 = sadd.s32 1, %s801_s16  ;;  %s805_s17 = sphi %s845_s17, %s22_s17   ;;  %s801_s16 = sphi %s843_s16, %s1129_s16   ;;  %s797_s15 = sphi %s841_s15, %s1128_s15   ;;  %s793_s14 = sphi %s839_s14, %s1127_s14   ;;  %s789_s13 = sphi %s837_s13, %s1126_s13   ;;  %s785_s12 = sphi %s835_s12, %s1125_s12  }
   0x9   : > { %p36_p0 = scmp.ge.s32.totalorder %s34_s19, 2  ;;  %s43_s20 = sadd.s32 1, %s793_s14 }
   0xa   : > { %p50_p1 = scmp.ne.s32.totalorder %s793_s14, %s789_s13  ;;  %p51_p2 = scmp.eq.s32.totalorder %s805_s17, 0 }
   0xb   : > { %s1131_s19 = smov (%p36_p0, %s34_s19), 0  ;;  %p56_p4 = scmp.ne.s32.totalorder %s789_s13, %s785_s12 }
   0xc   : > { %p871_p3 = por %p51_p2, %p50_p1  ;;  %s38_s22 = ssub.s32 %s801_s16, %s1131_s19 }
   0xd   : > { %p57_p5 = scmp.eq.s32.totalorder %s520_s18, 0  ;;  %p41_p6 = scmp.eq.s32.totalorder %s38_s22, 0 }
   0xe   : > { %p563_p8 = scmp.lt.s32.totalorder %s805_s17, 2  ;;  %s889_s25 = sand.u32 1, %s793_s14  }
   0xf   : > { %p880_p7 = por %p57_p5, %p56_p4  ;;  %s541_s26 = sshll.u32 %s801_s16, 7 }
  0x10   : > { %s886_s24 = scalar_select %p41_p6, %s793_s14, %s43_s20  }
  0x11   : > { %s1115_s23 = scalar_select %p880_p7, 1, 0 }
  0x12   : > { %s523_s27 = sshll.u32 %s889_s25, 3  ;;  %s896_s30 = scalar_lea.hbm %s1109_s0, %s541_s26 }
  0x13   : > { %s154_s4 = scalar_lea.vmem [#allocation2], %s523_s27  ;;  %p900_p9 = pnand %p563_p8, %p871_p3 }
  0x14   : > { %s164_s5 = sshll.u32 %s154_s4, 4  ;;  %s151_s7 = scalar_lea.sflag [#allocation3], %s889_s25  ;;  %s904_s5 = int_to_ptr.vmem [resolvable:$true] %s164_s5 }
  0x15   : > { %s631_s8 = scalar_lea.hbm %s896_s30, 128  ;;  %p633_p13 = pneg %p900_p9 }
  0x16   : > { %p632_p12 = scmp.ne.s32.totalorder %s896_s30, %s631_s8  ;;  %s636_s11 = scalar_lea.hbm %s1109_s0, 256 }
  0x17   : > { %p637_p2 = scmp.lt.u32.totalorder %s896_s30, %s1109_s0  ;;  %p638_p3 = scmp.lt.u32.totalorder %s636_s11, %s631_s8 }
  0x18   : > { %p634_p0 = pnand %p633_p13, %p632_p12  ;;  %p640_p5 = scmp.lt.u32.totalorder %s631_s8, %s896_s30 }
  0x19   : > { %p639_p4 = por %p638_p3, %p637_p2 }
  0x1a   : > { %p635_p1 = pneg %p634_p0 }
  0x1b   : > { %p641_p6 = por %p640_p5, %p639_p4 }
  0x1d   : > { %p642_p8 = pnand %p641_p6, %p635_p1 }
  0x1f   : > { %645 = shalt.err (!%p642_p8)
}
  0x20   : > { %s646_s21 = scalar_lea.vmem %s904_s5, 128  ;;  %s807_s22 = smov [#allocation2]  }
  0x21   : > { %p647_p12 = scmp.ne.s32.totalorder %s904_s5, %s646_s21  ;;  %s651_s26 = sshll.u32 %s807_s22, 4  ;;  %s652_s26 = int_to_ptr.vmem [resolvable:$false] %s651_s26 }
  0x22   : > { %s653_s27 = scalar_lea.vmem %s652_s26, 256  ;;  %p654_p11 = scmp.lt.s32.totalorder %s904_s5, %s652_s26 }
  0x23   : > { %p649_p0 = pnand %p647_p12, %p633_p13  ;;  %p655_p2 = scmp.lt.s32.totalorder %s653_s27, %s646_s21 }
  0x25   : > { %p650_p10 = pneg %p649_p0  ;;  %p656_p3 = por %p655_p2, %p654_p11 }
  0x27   : > { %p657_p4 = pnand %p656_p3, %p650_p10 }
  0x29   : > { %660 = shalt.err (!%p657_p4)
}
  0x2a   : > { %559 = dma.hbm_to_vmem [thread:$0]  (!%p900_p9), %s896_s30, 128, %s904_s5, %s151_s7  }
  0x2b   : > { %p1117_p1 = scmp.lt.s32.totalorder %s805_s17, 3  ;;  %p1118_p5 = scmp.ge.s32.totalorder %s805_s17, 1 }
  0x2c   : > { %s526_s29 = sshll.u32 %s889_s25, 1  ;;  %s542_s4 = sshll.u32 %s801_s16, 5 }
  0x2d   : > { %p938_p6 = pnand %p1118_p5, %p1117_p1  ;;  %s947_s10 = scalar_lea.hbm %s1110_s1, %s542_s4 }
  0x2e   : > { %s175_s11 = scalar_lea.vmem [#allocation5], %s526_s29  ;;  %s172_s30 = scalar_lea.sflag [#allocation6], %s889_s25 }
  0x2f   : > { %s1119_s28 = scalar_select %p938_p6, 1, 0 }
  0x30   : > { %s185_s12 = sshll.u32 %s175_s11, 4  ;;  %s661_s5 = scalar_lea.hbm %s947_s10, 32  ;;  %s186_s12 = int_to_ptr.vmem [resolvable:$true] %s185_s12 }
  0x31   : > { %p662_p10 = scmp.ne.s32.totalorder %s947_s10, %s661_s5  ;;  %s666_s21 = scalar_lea.hbm %s1110_s1, 64 }
  0x32   : > { %p667_p12 = scmp.lt.u32.totalorder %s947_s10, %s1110_s1  ;;  %p668_p0 = scmp.lt.u32.totalorder %s666_s21, %s661_s5 }
  0x33   : > { %p664_p11 = pnand %p662_p10, %p633_p13  ;;  %p670_p3 = scmp.lt.u32.totalorder %s661_s5, %s947_s10 }
  0x34   : > { %p669_p2 = por %p668_p0, %p667_p12 }
  0x35   : > { %p665_p8 = pneg %p664_p11 }
  0x36   : > { %p671_p4 = por %p670_p3, %p669_p2 }
  0x38   : > { %p672_p1 = pnand %p671_p4, %p665_p8 }
  0x3a   : > { %675 = shalt.err (!%p672_p1)
}
  0x3b   : > { %s676_s25 = scalar_lea.vmem %s186_s12, 32  ;;  %s808_s27 = smov [#allocation5]  }
  0x3c   : > { %p677_p5 = scmp.ne.s32.totalorder %s186_s12, %s676_s25  ;;  %s681_s29 = sshll.u32 %s808_s27, 4  ;;  %s682_s29 = int_to_ptr.vmem [resolvable:$false] %s681_s29 }
  0x3d   : > { %s683_s4 = scalar_lea.vmem %s682_s29, 64  ;;  %p684_p7 = scmp.lt.s32.totalorder %s186_s12, %s682_s29 }
  0x3e   : > { %p679_p10 = pnand %p677_p5, %p633_p13  ;;  %p685_p6 = scmp.lt.s32.totalorder %s683_s4, %s676_s25 }
  0x40   : > { %p680_p11 = pneg %p679_p10  ;;  %p686_p0 = por %p685_p6, %p684_p7 }
  0x42   : > { %p687_p12 = pnand %p686_p0, %p680_p11 }
  0x44   : > { %690 = shalt.err (!%p687_p12)
}
  0x45   : > { %562 = dma.hbm_to_vmem [thread:$0]  (!%p900_p9), %s947_s10, 32, %s186_s12, %s172_s30  }
  0x46   : > { %p1120_p8 = scmp.ne.s32.totalorder %s1119_s28, 0 }
  0x47   : > { %s196_s8 = sand.u32 (!%p1120_p8), 1, %s789_s13   ;;  %p1121_p13 = scmp.ne.s32.totalorder (!%p1120_p8), %s1115_s23, 0 }
  0x48   : > { %194 = sbr.rel (%p1120_p8) target bundleno = 183 (0xb7), region = 28  ;;  %s530_s9 = sshll.u32 (!%p1120_p8), %s196_s8, 3 }
  0x49   : > { %s197_s11 = scalar_lea.sflag (!%p1120_p8), [#allocation3], %s196_s8  ;;  %s200_s5 = scalar_lea.vmem (!%p1120_p8), [#allocation2], %s530_s9 }
  0x4f   : > { %768 = dma.done.wait (%p1121_p13), %s197_s11, 128  }
  0x50   : > { %770 = vsyncadd (%p1121_p13), %s197_s11, 4294967168  ;;  %s531_s7 = sshll.u32 %s196_s8, 1  ;;  %s206_s20 = scalar_lea.sflag [#allocation6], %s196_s8 }
  0x51   : > { %s209_s6 = scalar_lea.vmem [#allocation5], %s531_s7 }
  0x52   : > { %772 = dma.done.wait (%p1121_p13), %s206_s20, 32  }
  0x53   : > { %774 = vsyncadd (%p1121_p13), %s206_s20, 4294967264  ;;  %p234_p7 = scmp.eq.s32.totalorder %s797_s15, 0 }
  0x54   : > { %v240_v0 = vlaneseq (%p234_p7)  ;;  %v809_v1 = vmov (%p234_p7), 0.0  }
  0x55   : > { %239 = sbr.rel (!%p234_p7) target bundleno = 92 (0x5c), region = 40 }
  0x56   : > { %vm242_vm0 = vcmp.lt.s32.totalorder (%p234_p7), %v240_v0, 256 }
  0x57   : > { %244 = vst.msk [vmem:[#allocation7] sm:$0x3] (%p234_p7), %vm242_vm0, %v809_v1  ;;  %245 = vst.msk [vmem:[#allocation8] sm:$0x3] (%p234_p7), %vm242_vm0, %v809_v1 }
  0x5c PF: > { %v981_v2 = vld [vmem:[%s200_s5] sm:$0xff]  ;;  %v983_v3 = vld [vmem:[%s209_s6] sm:$0x3]  ;;  %vm266_vm1 = vcmask 1043456   ;;  %v307_v4 = vlaneseq  ;;  %v810_v9 = vmov 1966171168  }
  0x5d   : > { %v987_v5 = vcombine.high %v981_v2, %v981_v2  ;;  %v267_v6 = vsel %vm266_vm1, %v981_v2, -inf  ;;  %vm335_vm2 = vcmp.ne.s32.totalorder %v983_v3, 4294967295  ;;  %v362_v10 = vunpack.c.l.s4 %v810_v9  ;;  %s813_s15 = smov [#allocation8]   ;;  %p1023_p9 = scmp.eq.s32.totalorder %s520_s18, 1 }
  0x5e   : > { %v268_v7 = vrot.slane %v267_v6, 4  ;;  %v992_v8 = vshrl.u32 %v307_v4, 7  ;;  %v811_v14 = vmov 0   ;;  %v812_v28 = vmov 0.0   ;;  %v382_v37 = vld [vmem:[#allocation8] sm:$0x3] }
  0x5f   : > { %v274_v11 = vsel %vm266_vm1, %v987_v5, -inf  ;;  %v336_v15 = vsel %vm335_vm2, 1, %v811_v14  ;;  %v363_v20 = vunpack.c.0.s8 %v362_v10  ;;  %s421_s23 = sshll.u32 %s813_s15, 4  ;;  %vm1017_vm5 = vcmp.lt.s32.totalorder %v307_v4, 256  ;;  %s422_s23 = int_to_ptr.vmem [resolvable:$true] %s421_s23 }
  0x60   : > { %v269_v12 = vmax.f32 %v267_v6, %v268_v7  ;;  %v275_v13 = vrot.slane %v274_v11, 4  ;;  %v311_v16 = vsub.s32 0, %v992_v8  ;;  %v315_v17 = vsub.s32 1, %v992_v8  ;;  %s691_s10 = scalar_lea.vmem %s422_s23, 32  ;;  %p698_p4 = scmp.lt.s32.totalorder %s422_s23, %s422_s23 }
  0x61   : > { %v999_v27 = vsub.s32 %v363_v20, %v992_v8  ;;  %p692_p6 = scmp.ne.s32.totalorder %s422_s23, %s691_s10  ;;  %p699_p1 = scmp.lt.s32.totalorder %s691_s10, %s691_s10 }
  0x62   : > { %v270_v18 = vrot.slane %v269_v12, 2  ;;  %v276_v19 = vmax.f32 %v274_v11, %v275_v13  ;;  %v340_v21 = vrot.slane %v336_v15, %v311_v16  ;;  %v344_v22 = vrot.slane %v336_v15, %v315_v17 }
  0x63   : > { %v312_v44 = vrot.slane %v983_v3, %v311_v16  ;;  %p693_p2 = pnand %p692_p6, %p1023_p9  ;;  %p700_p5 = por %p699_p1, %p698_p4 }
  0x64   : > { %v271_v23 = vmax.f32 %v269_v12, %v270_v18  ;;  %v277_v24 = vrot.slane %v276_v19, 2  ;;  %vm345_vm3 = vcmp.ne.s32.totalorder %v340_v21, 0  ;;  %vm346_vm4 = vcmp.ne.s32.totalorder %v344_v22, 0 }
  0x65   : > { %v1001_v29 = vsel %vm345_vm3, 1.0, %v812_v28  ;;  %v1003_v30 = vsel %vm346_vm4, 1.0, %v812_v28  ;;  %p694_p3 = pneg %p693_p2 }
  0x66   : > { %v272_v25 = vrot.slane %v271_v23, 1  ;;  %v278_v26 = vmax.f32 %v276_v19, %v277_v24  ;;  %v385_v33 = vcombine.low %v1001_v29, %v1003_v30 }
  0x67   : > { %p701_p10 = pnand %p700_p5, %p694_p3 }
  0x68   : > { %v1005_v31 = vmax.f32 %v271_v23, %v272_v25  ;;  %v279_v32 = vrot.slane %v278_v26, 1  ;;  %v392_v36 = vrot.slane %v385_v33, %v999_v27 }
  0x6a   : > { %v1009_v34 = vmax.f32 %v278_v26, %v279_v32  ;;  %v281_v35 = vsub.f32 %v981_v2, %v1005_v31  ;;  %v399_v40 = vrot.slane %v392_v36, %v999_v27 }
  0x6c   : > { %v282_v38 = vsub.f32 %v987_v5, %v1009_v34  ;;  %v283_v39 = vmul.f32 1.442695, %v281_v35  ;;  %v401_v43 = vadd.f32 %v399_v40, %v382_v37 }
  0x6e   : > { %623 = vpow2.f32 %v283_v39  ;;  %v285_v42 = vmul.f32 1.442695, %v282_v38  ;;  %402 = vst.msk [vmem:[#allocation8] sm:$0x3] %vm1017_vm5, %v401_v43 }
  0x70   : > { %625 = vpow2.f32 %v285_v42 }
  0x71   : > { %704 = shalt.err (!%p701_p10)
}
  0x72   : > { %s705_s30 = scalar_lea.hbm %s1112_s3, 32 }
  0x73   : > { %p706_p11 = scmp.ne.s32.totalorder %s1112_s3, %s705_s30  ;;  %p711_p8 = scmp.lt.u32.totalorder %s705_s30, %s1112_s3 }
  0x75   : > { %p707_p0 = pnand %p706_p11, %p1023_p9 }
  0x77   : > { %p708_p12 = pneg %p707_p0 }
  0x79   : > { %p713_p13 = pnand %p711_p8, %p708_p12 }
  0x7b   : > { %716 = shalt.err (!%p713_p13)
}
  0x7c   : > { %551 = dma.vmem_to_hbm [thread:$0]  (%p1023_p9), %s422_s23, 32, %s1112_s3, [#allocation9]   ;;  %v316_v45 = vrot.slane %v983_v3, %v315_v17  ;;  %vm317_vm6 = vcmp.eq.s32.totalorder %v992_v8, %v312_v44  ;;  %v624_v47 = vpop.eup %623  ;;  %v357_v26 = vld [vmem:[#allocation7] sm:$0x3] }
  0x7d   : > { %v319_v46 = vsel %vm317_vm6, %v981_v2, 0.0  ;;  %v287_v48 = vsel %vm266_vm1, %v624_v47, 0.0  ;;  %v626_v50 = vpop.eup %625  ;;  %s814_s4 = smov [#allocation7]  }
  0x7e   : > { %vm318_vm7 = vcmp.eq.s32.totalorder %v992_v8, %v316_v45  ;;  %v288_v51 = vrot.slane %v287_v48, 4  ;;  %v321_v52 = vsel %vm266_vm1, %v319_v46, 0.0  ;;  %v294_v53 = vsel %vm266_vm1, %v626_v50, 0.0  ;;  %s410_s8 = sshll.u32 %s814_s4, 4  ;;  %s411_s8 = int_to_ptr.vmem [resolvable:$true] %s410_s8 }
  0x7f   : > { %v320_v49 = vsel %vm318_vm7, %v987_v5, 0.0  ;;  %v295_v55 = vrot.slane %v294_v53, 4  ;;  %v322_v57 = vrot.slane %v321_v52, 4  ;;  %s717_s9 = scalar_lea.vmem %s411_s8, 32  ;;  %p724_p3 = scmp.lt.s32.totalorder %s411_s8, %s411_s8 }
  0x80   : > { %v289_v54 = vadd.f32 %v288_v51, %v287_v48  ;;  %v328_v56 = vsel %vm266_vm1, %v320_v49, 0.0  ;;  %p718_p7 = scmp.ne.s32.totalorder %s411_s8, %s717_s9  ;;  %p725_p4 = scmp.lt.s32.totalorder %s717_s9, %s717_s9 }
  0x81   : > { %v296_v59 = vadd.f32 %v295_v55, %v294_v53  ;;  %v329_v60 = vrot.slane %v328_v56, 4  ;;  %v323_v63 = vadd.f32 %v322_v57, %v321_v52 }
  0x82   : > { %v290_v58 = vrot.slane %v289_v54, 2  ;;  %p719_p6 = pnand %p718_p7, %p1023_p9  ;;  %p726_p1 = por %p725_p4, %p724_p3 }
  0x83   : > { %v297_v62 = vrot.slane %v296_v59, 2  ;;  %v330_v2 = vadd.f32 %v329_v60, %v328_v56  ;;  %v324_v5 = vrot.slane %v323_v63, 2 }
  0x84   : > { %v291_v61 = vadd.f32 %v290_v58, %v289_v54  ;;  %p720_p2 = pneg %p719_p6 }
  0x85   : > { %v298_v1 = vadd.f32 %v297_v62, %v296_v59  ;;  %v331_v7 = vrot.slane %v330_v2, 2  ;;  %v325_v8 = vadd.f32 %v324_v5, %v323_v63 }
  0x86   : > { %v292_v0 = vrot.slane %v291_v61, 1  ;;  %p727_p5 = pnand %p726_p1, %p720_p2 }
  0x87   : > { %v299_v4 = vrot.slane %v298_v1, 1  ;;  %v332_v9 = vadd.f32 %v331_v7, %v330_v2  ;;  %v326_v10 = vrot.slane %v325_v8, 1 }
  0x88   : > { %v293_v3 = vadd.f32 %v292_v0, %v291_v61 }
  0x89   : > { %v300_v6 = vadd.f32 %v299_v4, %v298_v1  ;;  %v333_v11 = vrot.slane %v332_v9, 1  ;;  %v327_v14 = vadd.f32 %v326_v10, %v325_v8 }
  0x8a   : > { %627 = vlog2.f32 %v293_v3 }
  0x8b   : > { %629 = vlog2.f32 %v300_v6  ;;  %v334_v18 = vadd.f32 %v333_v11, %v332_v9 }
  0x94   : > { %v628_v12 = vpop.eup %627 }
  0x95   : > { %v302_v13 = vmul.f32 0.6931472, %v628_v12  ;;  %v630_v15 = vpop.eup %629 }
  0x96   : > { %v304_v16 = vmul.f32 0.6931472, %v630_v15 }
  0x97   : > { %v305_v17 = vadd.f32 %v302_v13, %v1005_v31 }
  0x98   : > { %v306_v19 = vadd.f32 %v304_v16, %v1009_v34 }
  0x99   : > { %v353_v20 = vsub.f32 %v305_v17, %v327_v14 }
  0x9a   : > { %v354_v21 = vsub.f32 %v306_v19, %v334_v18 }
  0x9b   : > { %v355_v22 = vmul.f32 %v1001_v29, %v353_v20 }
  0x9c   : > { %v356_v23 = vmul.f32 %v1003_v30, %v354_v21 }
  0x9e   : > { %v360_v24 = vcombine.low %v355_v22, %v356_v23 }
  0xa0   : > { %v367_v25 = vrot.slane %v360_v24, %v999_v27 }
  0xa2   : > { %v374_v28 = vrot.slane %v367_v25, %v999_v27 }
  0xa4   : > { %v376_v32 = vadd.f32 %v374_v28, %v357_v26 }
  0xa6   : > { %381 = vst.msk [vmem:[#allocation7] sm:$0x3] %vm1017_vm5, %v376_v32 }
  0xa7   : > { %730 = shalt.err (!%p727_p5)
}
  0xa8   : > { %s731_s7 = scalar_lea.hbm %s1111_s2, 32 }
  0xa9   : > { %p732_p10 = scmp.ne.s32.totalorder %s1111_s2, %s731_s7  ;;  %p737_p12 = scmp.lt.u32.totalorder %s731_s7, %s1111_s2 }
  0xab   : > { %p733_p11 = pnand %p732_p10, %p1023_p9 }
  0xad   : > { %p734_p0 = pneg %p733_p11 }
  0xaf   : > { %p739_p8 = pnand %p737_p12, %p734_p0 }
  0xb1   : > { %742 = shalt.err (!%p739_p8)
}
  0xb2   : > { %549 = dma.vmem_to_hbm [thread:$0]  (%p1023_p9), %s411_s8, 32, %s1111_s2, [#allocation4]  }
  0xb3   : > { %776 = dma.done.wait (%p1023_p9), [#allocation4], 32  }
  0xb4   : > { %778 = vsyncadd (%p1023_p9), [#allocation4], 4294967264 }
  0xb5   : > { %780 = dma.done.wait (%p1023_p9), [#allocation9], 32  }
  0xb6   : > { %782 = vsyncadd (%p1023_p9), [#allocation9], 4294967264 }
  0xb7 PF: > { %s22_s17 = sadd.s32 1, %s805_s17   ;;  %s1125_s12 = smov %s789_s13 }
  0xb8   : > { %p19_p13 = scmp.ge.s32.totalorder %s22_s17, 4   ;;  %s1126_s13 = smov %s793_s14 }
  0xb9   : > { %s1127_s14 = smov %s886_s24  ;;  %s1128_s15 = smov %s801_s16 }
  0xba   : > { %s1129_s16 = smov %s1131_s19  ;;  %21 = sbr.rel (!%p19_p13) target bundleno = 8 (0x8), region = 90 }
  0xc1   :  { %438 = vsyncpa [#allocation3], 1 }
  0xc2   :  { %440 = vsyncpa [#allocation3 + $0x1], 1 }
  0xc3   :  { %441 = vsyncpa [#allocation6], 1 }
  0xc4   :  { %443 = vsyncpa [#allocation6 + $0x1], 1 }
  0xc5   :  { %444 = vsyncpa [#allocation4], 1 }
  0xc6   :  { %446 = vsyncpa [#allocation4 + $0x1], 1 }
  0xc7   :  { %447 = vsyncpa [#allocation9], 1 }

</bundles_post_ra>
